<compile_context>
chip_gen: v7x
topology: tpu7x:2x2x1
jax: 0.10.0
libtpu: 0.0.40
codegen_flags: <defaults>
</compile_context>

<pallas_src>
import functools

import jax
import jax.numpy as jnp
from jax import lax
from jax.experimental import pallas as pl
from jax.experimental.pallas import tpu as pltpu

EPS = 1e-5


def _ln_kernel(*refs, has_bias, lowp):
    if has_bias:
        x_ref, w_ref, b_ref, o_ref = refs
    else:
        x_ref, w_ref, o_ref = refs
        b_ref = None

    # Blocks are either (1, C, T) or (1, C, sub, T); channel axis is always 1.
    x32 = x_ref[...].astype(jnp.float32)
    c = x32.shape[1]
    inv_c = jnp.float32(1.0 / c)

    mu = jnp.sum(x32, axis=1, keepdims=True) * inv_c
    xc = x32 - mu                                   # centered -> two-pass variance
    var = jnp.sum(xc * xc, axis=1, keepdims=True) * inv_c
    inv = lax.rsqrt(var + jnp.float32(EPS))         # EUP, effectively free

    lowp = lowp and (x_ref.dtype != jnp.float32)
    dt = x_ref.dtype

    if has_bias:
        if lowp:
            y = (xc.astype(dt) * inv.astype(dt)) * w_ref[...].astype(dt) \
                + b_ref[...].astype(dt)
        else:
            y = xc * inv * w_ref[...].astype(jnp.float32) \
                + b_ref[...].astype(jnp.float32)
    else:
        # BiasFree variant divides x (NOT x - mu) by sqrt(var + eps), as in torch;
        # the variance still uses the mean.
        if lowp:
            y = (x_ref[...] * inv.astype(dt)) * w_ref[...].astype(dt)
        else:
            y = x32 * inv * w_ref[...].astype(jnp.float32)

    o_ref[...] = y.astype(o_ref.dtype)


def _tpu_config():
    """Returns (vmem_capacity_bytes, low_precision_normalize_ok)."""
    vmem_cap = 64 << 20          # conservative fallback (v7x-sized)
    try:
        vmem_cap = int(pltpu.get_tpu_info().vmem_capacity_bytes)
    except Exception:
        pass
    lowp_ok = False
    try:
        kind = jax.devices()[0].device_kind.lower()
        # bf16 VALU/EUP only on v6e and newer; keep f32 math on v2-v5.
        lowp_ok = ("tpu" in kind) and not any(
            g in kind for g in ("v2", "v3", "v4", "v5"))
    except Exception:
        lowp_ok = False
    return vmem_cap, lowp_ok


def _choose_tile_lanes(total_lanes, bytes_per_lane, target_bytes, batch,
                       min_steps=8):
    """Pick pixels-per-block: as big as the byte budget allows, but leaving
    enough grid steps for the DMA pipeline to overlap."""
    if total_lanes <= 128:
        return total_lanes                          # full dim (no 128 constraint)
    by_bytes = max(1, target_bytes // max(bytes_per_lane, 1))
    want_tiles = max(1, pl.cdiv(min_steps, max(batch, 1)))
    by_steps = pl.cdiv(total_lanes, want_tiles)
    tile = max(128, (min(by_bytes, by_steps) // 128) * 128)
    return min(tile, total_lanes)


def layernorm_nchw(x, weight, bias=None, ln_type="WithBias",
                   tile_target_bytes=None, min_grid_steps=8):
    """LayerNorm over the channel axis of an NCHW tensor (matches the PyTorch
    LayerNorm module: to_3d -> (BiasFree|WithBias)_LayerNorm -> to_4d)."""
    b, c, h, w = x.shape
    hw = h * w
    itemsize = x.dtype.itemsize

    vmem_cap, lowp_ok = _tpu_config()
    small_vmem = vmem_cap <= (64 << 20)             # v7x
    if tile_target_bytes is None:
        tile_target_bytes = (2 << 20) if small_vmem else (8 << 20)
    vmem_limit = min((40 << 20) if small_vmem else (96 << 20), vmem_cap)

    # Native sublane tile for this dtype (8 f32 / 16 bf16 / 32 int8).
    min_sub = max(8, 32 // itemsize)

    if c < min_sub and hw % min_sub == 0:
        # Fold a spatial factor onto the sublane axis so blocks carry no padding.
        sub = min_sub
        lanes = hw // sub
        xr = x.reshape(b, c, sub, lanes)
        w_r = weight.reshape(1, c, 1, 1)
        b_r = None if bias is None else bias.reshape(1, c, 1, 1)
        bytes_per_lane = c * sub * itemsize
        blk = None  # filled below
    else:
        sub = None
        lanes = hw
        xr = x.reshape(b, c, hw)
        w_r = weight.reshape(1, c, 1)
        b_r = None if bias is None else bias.reshape(1, c, 1)
        # Account for sublane padding of the C axis in the VMEM footprint.
        bytes_per_lane = pl.cdiv(c, min_sub) * min_sub * itemsize

    tile = _choose_tile_lanes(lanes, bytes_per_lane, tile_target_bytes, b,
                              min_grid_steps)
    grid = (b, pl.cdiv(lanes, tile))

    if sub is None:
        blk = (1, c, tile)
        idx = lambda bi, si: (bi, 0, si)
        pblk = (1, c, 1)
        pidx = lambda bi, si: (0, 0, 0)
    else:
        blk = (1, c, sub, tile)
        idx = lambda bi, si: (bi, 0, 0, si)
        pblk = (1, c, 1, 1)
        pidx = lambda bi, si: (0, 0, 0, 0)

    x_spec = pl.BlockSpec(blk, idx)
    o_spec = pl.BlockSpec(blk, idx)

    cp = pltpu.CompilerParams(
        dimension_semantics=("parallel", "parallel"),
        vmem_limit_bytes=int(vmem_limit),
    )

    n = b * c * hw
    cost = pl.CostEstimate(
        flops=int(8 * n),
        transcendentals=int(b * hw),
        bytes_accessed=int(2 * n * itemsize + 2 * c * weight.dtype.itemsize),
    )

    has_bias = ln_type != "BiasFree"
    if has_bias:
        assert bias is not None
        operands = (xr, w_r, b_r)
    else:
        operands = (xr, w_r)

    kernel = functools.partial(_ln_kernel, has_bias=has_bias, lowp=lowp_ok)

    def _call(param_spec):
        in_specs = [x_spec] + [param_spec] * (len(operands) - 1)
        return pl.pallas_call(
            kernel,
            out_shape=jax.ShapeDtypeStruct(xr.shape, x.dtype),
            grid=grid,
            in_specs=in_specs,
            out_specs=o_spec,
            compiler_params=cp,
            cost_estimate=cost,
        )(*operands)

    try:
        # Params never change across the grid -> single buffer is enough.
        out = _call(pl.BlockSpec(pblk, pidx, pipeline_mode=pl.Buffered(1)))
    except Exception:
        # Older JAX / lowering restriction: fall back to default buffering.
        out = _call(pl.BlockSpec(pblk, pidx))

    return out.reshape(b, c, h, w)


def _reference_nchw(x, weight, bias=None, ln_type="WithBias"):
    # pure-JAX reference mirroring the PyTorch semantics
    t = jnp.transpose(x, (0, 2, 3, 1)).astype(jnp.float32)  # b h w c
    mu = jnp.mean(t, axis=-1, keepdims=True)
    var = jnp.mean((t - mu) ** 2, axis=-1, keepdims=True)
    if ln_type == "BiasFree":
        y = t / jnp.sqrt(var + EPS) * weight
    else:
        y = (t - mu) / jnp.sqrt(var + EPS) * weight + bias
    return jnp.transpose(y.astype(x.dtype), (0, 3, 1, 2))


if __name__ == "__main__":
    key = jax.random.PRNGKey(0)
    k0, k1, k2, k3, k4 = jax.random.split(key, 5)

    # --- primary: module-sized NCHW input (C < 8 -> folded sublane layout) ---
    B, C, H, W = 2, 4, 16, 16
    x = jax.random.normal(k0, (B, C, H, W), dtype=jnp.float32)
    weight = 1.0 + 0.1 * jax.random.normal(k1, (C,), dtype=jnp.float32)
    bias = 0.1 * jax.random.normal(k2, (C,), dtype=jnp.float32)

    out_wb = jax.block_until_ready(layernorm_nchw(x, weight, bias, ln_type="WithBias"))
    ref_wb = _reference_nchw(x, weight, bias, ln_type="WithBias")
    assert out_wb.shape == (B, C, H, W)
    assert jnp.allclose(out_wb, ref_wb, atol=2e-5, rtol=2e-5)

    out_bf = jax.block_until_ready(layernorm_nchw(x, weight, ln_type="BiasFree"))
    ref_bf = _reference_nchw(x, weight, ln_type="BiasFree")
    assert jnp.allclose(out_bf, ref_bf, atol=2e-5, rtol=2e-5)

    # --- 3-D layout (C on sublanes) with a ragged last lane tile ---
    B2, C2, H2, W2 = 1, 8, 20, 20                   # hw=400 -> tiles 128+128+128+16
    x2 = jax.random.normal(k3, (B2, C2, H2, W2), dtype=jnp.float32)
    w2 = 1.0 + 0.1 * jax.random.normal(k1, (C2,), dtype=jnp.float32)
    b2 = 0.1 * jax.random.normal(k2, (C2,), dtype=jnp.float32)
    out2 = jax.block_until_ready(
        layernorm_nchw(x2, w2, b2, ln_type="WithBias", tile_target_bytes=4096))
    ref2 = _reference_nchw(x2, w2, b2, ln_type="WithBias")
    assert jnp.allclose(out2, ref2, atol=2e-5, rtol=2e-5)

    # --- folded layout with a ragged last lane tile ---
    B3, C3, H3, W3 = 1, 4, 40, 40                   # lanes=200 -> tiles 128 + 72
    x3 = jax.random.normal(k4, (B3, C3, H3, W3), dtype=jnp.float32)
    w3 = 1.0 + 0.1 * jax.random.normal(k1, (C3,), dtype=jnp.float32)
    b3 = 0.1 * jax.random.normal(k2, (C3,), dtype=jnp.float32)
    out3 = jax.block_until_ready(
        layernorm_nchw(x3, w3, b3, ln_type="WithBias", tile_target_bytes=4096))
    ref3 = _reference_nchw(x3, w3, b3, ln_type="WithBias")
    assert jnp.allclose(out3, ref3, atol=2e-5, rtol=2e-5)

    # --- bf16 input (exercises the low-precision normalize path on v6e+) ---
    xb = x.astype(jnp.bfloat16)
    wbf = weight.astype(jnp.bfloat16)
    bbf = bias.astype(jnp.bfloat16)
    outb = jax.block_until_ready(layernorm_nchw(xb, wbf, bbf, ln_type="WithBias"))
    refb = _reference_nchw(xb, wbf, bbf, ln_type="WithBias")
    assert jnp.allclose(outb.astype(jnp.float32), refb.astype(jnp.float32),
                        atol=0.15, rtol=0.05)

    print("KERNEL_OK")
</pallas_src>

<mosaic_0001>
module attributes {stable_mosaic.version = 11 : i64} {
  func.func @_ln_kernel(%arg0: i32, %arg1: i32, %arg2: memref<1x4x8x32xf32, #tpu.memory_space<vmem>>, %arg3: memref<1x4x1x1xf32, #tpu.memory_space<vmem>>, %arg4: memref<1x4x1x1xf32, #tpu.memory_space<vmem>>, %arg5: memref<1x4x8x32xf32, #tpu.memory_space<vmem>>) attributes {dimension_semantics = [#tpu.dimension_semantics<parallel>, #tpu.dimension_semantics<parallel>], iteration_bounds = array<i64: 2, 1>, scalar_prefetch = 0 : i64, scratch_operands = 0 : i64, tpu.core_type = #tpu.core_type<tc>, window_params = [{transform_indices = @transform_0, window_bounds = array<i64: 1, 4, 8, 32>}, {pipeline_mode = #tpu.pipeline_mode<synchronous>, transform_indices = @transform_1, window_bounds = array<i64: 1, 4, 1, 1>}, {pipeline_mode = #tpu.pipeline_mode<synchronous>, transform_indices = @transform_2, window_bounds = array<i64: 1, 4, 1, 1>}, {transform_indices = @transform_3, window_bounds = array<i64: 1, 4, 8, 32>}]} {
    %c0 = arith.constant 0 : index
    %c0_0 = arith.constant 0 : index
    %c0_1 = arith.constant 0 : index
    %c0_2 = arith.constant 0 : index
    %0 = vector.load %arg2[%c0, %c0_0, %c0_1, %c0_2] : memref<1x4x8x32xf32, #tpu.memory_space<vmem>>, vector<1x4x8x32xf32>
    %cst = arith.constant dense<0.000000e+00> : vector<1x8x32xf32>
    %1 = vector.multi_reduction <add>, %0, %cst [1] : vector<1x4x8x32xf32> to vector<1x8x32xf32>
    %2 = vector.shape_cast %1 : vector<1x8x32xf32> to vector<1x1x8x32xf32>
    %cst_3 = arith.constant 2.500000e-01 : f32
    %3 = vector.broadcast %cst_3 : f32 to vector<1x1x8x32xf32>
    %4 = arith.mulf %2, %3 : vector<1x1x8x32xf32>
    %5 = vector.broadcast %4 : vector<1x1x8x32xf32> to vector<1x4x8x32xf32>
    %6 = arith.subf %0, %5 : vector<1x4x8x32xf32>
    %7 = arith.mulf %6, %6 : vector<1x4x8x32xf32>
    %cst_4 = arith.constant dense<0.000000e+00> : vector<1x8x32xf32>
    %8 = vector.multi_reduction <add>, %7, %cst_4 [1] : vector<1x4x8x32xf32> to vector<1x8x32xf32>
    %9 = vector.shape_cast %8 : vector<1x8x32xf32> to vector<1x1x8x32xf32>
    %cst_5 = arith.constant 2.500000e-01 : f32
    %10 = vector.broadcast %cst_5 : f32 to vector<1x1x8x32xf32>
    %11 = arith.mulf %9, %10 : vector<1x1x8x32xf32>
    %cst_6 = arith.constant 9.99999974E-6 : f32
    %12 = vector.broadcast %cst_6 : f32 to vector<1x1x8x32xf32>
    %13 = arith.addf %11, %12 : vector<1x1x8x32xf32>
    %14 = math.rsqrt %13 : vector<1x1x8x32xf32>
    %15 = vector.broadcast %14 : vector<1x1x8x32xf32> to vector<1x4x8x32xf32>
    %16 = arith.mulf %6, %15 : vector<1x4x8x32xf32>
    %c0_7 = arith.constant 0 : index
    %c0_8 = arith.constant 0 : index
    %c0_9 = arith.constant 0 : index
    %c0_10 = arith.constant 0 : index
    %17 = vector.load %arg3[%c0_7, %c0_8, %c0_9, %c0_10] : memref<1x4x1x1xf32, #tpu.memory_space<vmem>>, vector<1x4x1x1xf32>
    %18 = vector.broadcast %17 : vector<1x4x1x1xf32> to vector<1x4x8x32xf32>
    %19 = arith.mulf %16, %18 : vector<1x4x8x32xf32>
    %c0_11 = arith.constant 0 : index
    %c0_12 = arith.constant 0 : index
    %c0_13 = arith.constant 0 : index
    %c0_14 = arith.constant 0 : index
    %20 = vector.load %arg4[%c0_11, %c0_12, %c0_13, %c0_14] : memref<1x4x1x1xf32, #tpu.memory_space<vmem>>, vector<1x4x1x1xf32>
    %21 = vector.broadcast %20 : vector<1x4x1x1xf32> to vector<1x4x8x32xf32>
    %22 = arith.addf %19, %21 : vector<1x4x8x32xf32>
    %c0_15 = arith.constant 0 : index
    %c0_16 = arith.constant 0 : index
    %c0_17 = arith.constant 0 : index
    %c0_18 = arith.constant 0 : index
    %23 = vector.load %arg5[%c0_15, %c0_16, %c0_17, %c0_18] : memref<1x4x8x32xf32, #tpu.memory_space<vmem>>, vector<1x4x8x32xf32>
    tpu.vector_store %arg5[%c0_15, %c0_16, %c0_17, %c0_18], %22 {strides = array<i32>} : memref<1x4x8x32xf32, #tpu.memory_space<vmem>>, vector<1x4x8x32xf32>,
    return
  }
  func.func @transform_0(%arg0: i32, %arg1: i32) -> (i32, i32, i32, i32) {
    %c0_i32 = arith.constant 0 : i32
    %c0_i32_0 = arith.constant 0 : i32
    %c0_i32_1 = arith.constant 0 : i32
    return %arg0, %c0_i32, %c0_i32_0, %arg1 : i32, i32, i32, i32
  }
  func.func @transform_1(%arg0: i32, %arg1: i32) -> (i32, i32, i32, i32) {
    %c0_i32 = arith.constant 0 : i32
    %c0_i32_0 = arith.constant 0 : i32
    %c0_i32_1 = arith.constant 0 : i32
    %c0_i32_2 = arith.constant 0 : i32
    %c0_i32_3 = arith.constant 0 : i32
    return %c0_i32, %c0_i32_0, %c0_i32_1, %c0_i32_2 : i32, i32, i32, i32
  }
  func.func @transform_2(%arg0: i32, %arg1: i32) -> (i32, i32, i32, i32) {
    %c0_i32 = arith.constant 0 : i32
    %c0_i32_0 = arith.constant 0 : i32
    %c0_i32_1 = arith.constant 0 : i32
    %c0_i32_2 = arith.constant 0 : i32
    %c0_i32_3 = arith.constant 0 : i32
    return %c0_i32, %c0_i32_0, %c0_i32_1, %c0_i32_2 : i32, i32, i32, i32
  }
  func.func @transform_3(%arg0: i32, %arg1: i32) -> (i32, i32, i32, i32) {
    %c0_i32 = arith.constant 0 : i32
    %c0_i32_0 = arith.constant 0 : i32
    %c0_i32_1 = arith.constant 0 : i32
    return %arg0, %c0_i32, %c0_i32_0, %arg1 : i32, i32, i32, i32
  }
}

module attributes {stable_mosaic.version = 11 : i64} {
  func.func @_ln_kernel(%arg0: i32, %arg1: i32, %arg2: memref<1x4x8x32xf32, #tpu.memory_space<vmem>>, %arg3: memref<1x4x1x1xf32, #tpu.memory_space<vmem>>, %arg4: memref<1x4x1x1xf32, #tpu.memory_space<vmem>>, %arg5: memref<1x4x8x32xf32, #tpu.memory_space<vmem>>) attributes {dimension_semantics = [#tpu.dimension_semantics<parallel>, #tpu.dimension_semantics<parallel>], iteration_bounds = array<i64: 2, 1>, scalar_prefetch = 0 : i64, scratch_operands = 0 : i64, tpu.core_type = #tpu.core_type<tc>, window_params = [{transform_indices = @transform_0, window_bounds = array<i64: 1, 4, 8, 32>}, {pipeline_mode = #tpu.pipeline_mode<synchronous>, transform_indices = @transform_1, window_bounds = array<i64: 1, 4, 1, 1>}, {pipeline_mode = #tpu.pipeline_mode<synchronous>, transform_indices = @transform_2, window_bounds = array<i64: 1, 4, 1, 1>}, {transform_indices = @transform_3, window_bounds = array<i64: 1, 4, 8, 32>}]} {
    %c0 = arith.constant 0 : index
    %c0_0 = arith.constant 0 : index
    %c0_1 = arith.constant 0 : index
    %c0_2 = arith.constant 0 : index
    %0 = vector.load %arg2[%c0, %c0_0, %c0_1, %c0_2] : memref<1x4x8x32xf32, #tpu.memory_space<vmem>>, vector<1x4x8x32xf32>
    %cst = arith.constant dense<0.000000e+00> : vector<1x8x32xf32>
    %1 = vector.multi_reduction <add>, %0, %cst [1] : vector<1x4x8x32xf32> to vector<1x8x32xf32>
    %2 = vector.shape_cast %1 : vector<1x8x32xf32> to vector<1x1x8x32xf32>
    %cst_3 = arith.constant 2.500000e-01 : f32
    %3 = vector.broadcast %cst_3 : f32 to vector<1x1x8x32xf32>
    %4 = arith.mulf %2, %3 : vector<1x1x8x32xf32>
    %5 = vector.broadcast %4 : vector<1x1x8x32xf32> to vector<1x4x8x32xf32>
    %6 = arith.subf %0, %5 : vector<1x4x8x32xf32>
    %7 = arith.mulf %6, %6 : vector<1x4x8x32xf32>
    %cst_4 = arith.constant dense<0.000000e+00> : vector<1x8x32xf32>
    %8 = vector.multi_reduction <add>, %7, %cst_4 [1] : vector<1x4x8x32xf32> to vector<1x8x32xf32>
    %9 = vector.shape_cast %8 : vector<1x8x32xf32> to vector<1x1x8x32xf32>
    %cst_5 = arith.constant 2.500000e-01 : f32
    %10 = vector.broadcast %cst_5 : f32 to vector<1x1x8x32xf32>
    %11 = arith.mulf %9, %10 : vector<1x1x8x32xf32>
    %cst_6 = arith.constant 9.99999974E-6 : f32
    %12 = vector.broadcast %cst_6 : f32 to vector<1x1x8x32xf32>
    %13 = arith.addf %11, %12 : vector<1x1x8x32xf32>
    %14 = math.rsqrt %13 : vector<1x1x8x32xf32>
    %15 = vector.broadcast %14 : vector<1x1x8x32xf32> to vector<1x4x8x32xf32>
    %16 = arith.mulf %6, %15 : vector<1x4x8x32xf32>
    %c0_7 = arith.constant 0 : index
    %c0_8 = arith.constant 0 : index
    %c0_9 = arith.constant 0 : index
    %c0_10 = arith.constant 0 : index
    %17 = vector.load %arg3[%c0_7, %c0_8, %c0_9, %c0_10] : memref<1x4x1x1xf32, #tpu.memory_space<vmem>>, vector<1x4x1x1xf32>
    %18 = vector.broadcast %17 : vector<1x4x1x1xf32> to vector<1x4x8x32xf32>
    %19 = arith.mulf %16, %18 : vector<1x4x8x32xf32>
    %c0_11 = arith.constant 0 : index
    %c0_12 = arith.constant 0 : index
    %c0_13 = arith.constant 0 : index
    %c0_14 = arith.constant 0 : index
    %20 = vector.load %arg4[%c0_11, %c0_12, %c0_13, %c0_14] : memref<1x4x1x1xf32, #tpu.memory_space<vmem>>, vector<1x4x1x1xf32>
    %21 = vector.broadcast %20 : vector<1x4x1x1xf32> to vector<1x4x8x32xf32>
    %22 = arith.addf %19, %21 : vector<1x4x8x32xf32>
    %c0_15 = arith.constant 0 : index
    %c0_16 = arith.constant 0 : index
    %c0_17 = arith.constant 0 : index
    %c0_18 = arith.constant 0 : index
    %23 = vector.load %arg5[%c0_15, %c0_16, %c0_17, %c0_18] : memref<1x4x8x32xf32, #tpu.memory_space<vmem>>, vector<1x4x8x32xf32>
    tpu.vector_store %arg5[%c0_15, %c0_16, %c0_17, %c0_18], %22 {strides = array<i32>} : memref<1x4x8x32xf32, #tpu.memory_space<vmem>>, vector<1x4x8x32xf32>,
    return
  }
  func.func @transform_0(%arg0: i32, %arg1: i32) -> (i32, i32, i32, i32) {
    %c0_i32 = arith.constant 0 : i32
    %c0_i32_0 = arith.constant 0 : i32
    %c0_i32_1 = arith.constant 0 : i32
    return %arg0, %c0_i32, %c0_i32_0, %arg1 : i32, i32, i32, i32
  }
  func.func @transform_1(%arg0: i32, %arg1: i32) -> (i32, i32, i32, i32) {
    %c0_i32 = arith.constant 0 : i32
    %c0_i32_0 = arith.constant 0 : i32
    %c0_i32_1 = arith.constant 0 : i32
    %c0_i32_2 = arith.constant 0 : i32
    %c0_i32_3 = arith.constant 0 : i32
    return %c0_i32, %c0_i32_0, %c0_i32_1, %c0_i32_2 : i32, i32, i32, i32
  }
  func.func @transform_2(%arg0: i32, %arg1: i32) -> (i32, i32, i32, i32) {
    %c0_i32 = arith.constant 0 : i32
    %c0_i32_0 = arith.constant 0 : i32
    %c0_i32_1 = arith.constant 0 : i32
    %c0_i32_2 = arith.constant 0 : i32
    %c0_i32_3 = arith.constant 0 : i32
    return %c0_i32, %c0_i32_0, %c0_i32_1, %c0_i32_2 : i32, i32, i32, i32
  }
  func.func @transform_3(%arg0: i32, %arg1: i32) -> (i32, i32, i32, i32) {
    %c0_i32 = arith.constant 0 : i32
    %c0_i32_0 = arith.constant 0 : i32
    %c0_i32_1 = arith.constant 0 : i32
    return %arg0, %c0_i32, %c0_i32_0, %arg1 : i32, i32, i32, i32
  }
}

</mosaic_0001>

<bundles_post_ra>
// kernel: tpu_custom_call.1
= control target key start
LH: loop header
LB: loop body
LE: loop exit
PB: predicated region body
PF: predicated region fallthrough
CT: control target
= control target key end

     0   :  { %8 = vsyncpa [#allocation3], 0  ;;  %s885_s0 = inlined_call_operand.hbm [shape: f32[2,4,8,32], index: 0, kind: input, shape index: {}]   ;;  %s886_s1 = inlined_call_operand.vmem [shape: f32[1,4,1,1], index: 1, kind: input, shape index: {}]   ;;  %s887_s2 = inlined_call_operand.vmem [shape: f32[1,4,1,1], index: 2, kind: input, shape index: {}]   ;;  %s888_s3 = inlined_call_operand.hbm [shape: f32[2,4,8,32], index: 3, kind: output, shape index: {}]  }
   0x1   :  { %10 = vsyncpa [#allocation3 + $0x1], 0 }
   0x2   :  { %11 = vsyncpa [#allocation4], 0 }
   0x3   :  { %13 = vsyncpa [#allocation4 + $0x1], 0  ;;  %s670_s12 = smov 0   ;;  %s672_s13 = smov 0  }
   0x4   :  { %s674_s14 = smov 0   ;;  %s676_s15 = smov 0  }
   0x5   :  { %s678_s16 = smov 0   ;;  %s680_s17 = smov 0  }
   0x6 LB: > { %s433_s18 = sadd.s32 4294967295, %s641_s17   ;;  %s434_s19 = sadd.s32 4294967294, %s641_s17   ;;  %s641_s17 = sphi %s680_s17, %s19_s17   ;;  %s637_s16 = sphi %s678_s16, %s903_s16   ;;  %s633_s15 = sphi %s676_s15, %s902_s15   ;;  %s629_s14 = sphi %s674_s14, %s901_s14   ;;  %s625_s13 = sphi %s672_s13, %s900_s13   ;;  %s621_s12 = sphi %s670_s12, %s899_s12  }
   0x7   : > { %s31_s20 = sadd.s32 1, %s637_s16  ;;  %s40_s21 = sadd.s32 1, %s629_s14 }
   0x8   : > { %p33_p0 = scmp.ge.s32.totalorder %s31_s20, 2  ;;  %p47_p1 = scmp.ne.s32.totalorder %s629_s14, %s625_s13 }
   0x9   : > { %p48_p2 = scmp.eq.s32.totalorder %s641_s17, 0  ;;  %p53_p3 = scmp.ne.s32.totalorder %s625_s13, %s621_s12 }
   0xa   : > { %s905_s20 = smov (%p33_p0, %s31_s20), 0  ;;  %p54_p5 = scmp.eq.s32.totalorder %s433_s18, 0 }
   0xb   : > { %p711_p4 = por %p48_p2, %p47_p1  ;;  %s35_s23 = ssub.s32 %s637_s16, %s905_s20 }
   0xc   : > { %p121_p6 = scmp.eq.s32.totalorder %s433_s18, 1  ;;  %p38_p7 = scmp.eq.s32.totalorder %s35_s23, 0 }
   0xd   : > { %p717_p8 = por %p54_p5, %p53_p3  ;;  %p127_p10 = scmp.eq.s32.totalorder %s434_s19, 1 }
   0xe   : > { %p721_p9 = por %p121_p6, %p47_p1  ;;  %p470_p13 = scmp.lt.s32.totalorder %s641_s17, 2 }
   0xf   : > { %s726_s26 = scalar_select %p38_p7, %s629_s14, %s40_s21  }
  0x10   : > { %s892_s25 = scalar_select %p721_p9, 1, 0 }
  0x11   : > { %p728_p11 = por %p127_p10, %p53_p3  ;;  %s153_s28 = sand.u32 1, %s629_s14  }
  0x12   : > { %s437_s29 = sshll.u32 %s153_s28, 5  ;;  %s456_s30 = sshll.u32 %s637_s16, 9 }
  0x13   : > { %s893_s27 = scalar_select %p728_p11, 1, 0 }
  0x14   : > { %s739_s6 = scalar_lea.hbm %s885_s0, %s456_s30  ;;  %s157_s7 = scalar_lea.vmem [#allocation2], %s437_s29 }
  0x15   : > { %s165_s8 = sshll.u32 %s157_s7, 4  ;;  %p745_p0 = pnand %p470_p13, %p711_p4  ;;  %s741_s8 = int_to_ptr.vmem [resolvable:$true] %s165_s8 }
  0x16   : > { %s750_s10 = scalar_lea.sflag [#allocation3], %s153_s28  ;;  %s529_s11 = scalar_lea.hbm %s739_s6, 512 }
  0x17   : > { %p530_p2 = scmp.ne.s32.totalorder %s739_s6, %s529_s11  ;;  %p531_p3 = pneg %p745_p0 }
  0x18   : > { %s534_s21 = scalar_lea.hbm %s885_s0, 1024  ;;  %p535_p4 = scmp.lt.u32.totalorder %s739_s6, %s885_s0 }
  0x19   : > { %p532_p5 = pnand %p531_p3, %p530_p2  ;;  %p536_p7 = scmp.lt.u32.totalorder %s534_s21, %s529_s11 }
  0x1a   : > { %p538_p13 = scmp.lt.u32.totalorder %s529_s11, %s739_s6 }
  0x1b   : > { %p533_p6 = pneg %p532_p5  ;;  %p537_p10 = por %p536_p7, %p535_p4 }
  0x1d   : > { %p539_p12 = por %p538_p13, %p537_p10 }
  0x1f   : > { %p540_p1 = pnand %p539_p12, %p533_p6 }
  0x21   : > { %543 = shalt.err (!%p540_p1)
}
  0x22   : > { %s544_s28 = scalar_lea.vmem %s741_s8, 512  ;;  %s643_s29 = smov [#allocation2]  }
  0x23   : > { %p545_p2 = scmp.ne.s32.totalorder %s741_s8, %s544_s28  ;;  %s549_s30 = sshll.u32 %s643_s29, 4  ;;  %s550_s30 = int_to_ptr.vmem [resolvable:$false] %s549_s30 }
  0x24   : > { %s551_s4 = scalar_lea.vmem %s550_s30, 1024  ;;  %p552_p9 = scmp.lt.s32.totalorder %s741_s8, %s550_s30 }
  0x25   : > { %p547_p5 = pnand %p545_p2, %p531_p3  ;;  %p553_p4 = scmp.lt.s32.totalorder %s551_s4, %s544_s28 }
  0x27   : > { %p548_p11 = pneg %p547_p5  ;;  %p554_p7 = por %p553_p4, %p552_p9 }
  0x29   : > { %p555_p10 = pnand %p554_p7, %p548_p11 }
  0x2b   : > { %558 = shalt.err (!%p555_p10)
}
  0x2c   : > { %s644_s5 = smov 128   ;;  %s645_s7 = smov 8  }
  0x2d   : > { %465 = dma.hbm_to_vmem [thread:$0]  (!%p745_p0), %s739_s6, 512, %s741_s8, %s750_s10, %s644_s5, %s644_s5, %s645_s7  }
  0x2e   : > { %p173_p12 = scmp.lt.s32.totalorder %s641_s17, 3  ;;  %p895_p1 = scmp.ge.s32.totalorder %s641_s17, 1 }
  0x30   : > { %p174_p3 = pnand %p895_p1, %p173_p12 }
  0x31   : > { %s782_s11 = sand.u32 (!%p174_p3), 1, %s625_s13  }
  0x32   : > { %177 = sbr.rel (%p174_p3) target bundleno = 217 (0xd9), region = 32  ;;  %s441_s18 = sshll.u32 (!%p174_p3), %s782_s11, 5 }
  0x33   : > { %s180_s19 = scalar_lea.sflag (!%p174_p3), [#allocation3], %s782_s11  ;;  %s183_s21 = scalar_lea.vmem (!%p174_p3), [#allocation2], %s441_s18 }
  0x39   : > { %612 = dma.done.wait (%p717_p8), %s180_s19, 512  }
  0x3a   : > { %614 = vsyncadd (%p717_p8), %s180_s19, 4294966784  ;;  %v646_v0 = vmov 0   ;;  %v445_v1 = vld [vmem:[%s886_s1 + $0x2] ss:$0 sm:$0xff]  ;;  %v443_v2 = vld [vmem:[%s886_s1] ss:$0 sm:$0xff] }
  0x3b   : > { %526 = vset.pattern.permute.xlu1 %v646_v0  ;;  %525 = vset.pattern.permute.xlu0 %v646_v0  ;;  %v446_v3 = vld [vmem:[%s886_s1 + $0x3] ss:$0 sm:$0xff]  ;;  %v444_v4 = vld [vmem:[%s886_s1 + $0x1] ss:$0 sm:$0xff]  ;;  %v447_v6 = vld [vmem:[%s887_s2] ss:$0 sm:$0xff] }
  0x3c   : > { %274 = vperm.xlu1 %526, %v445_v1   ;;  %266 = vperm.xlu0 %525, %v443_v2   ;;  %v448_v5 = vld [vmem:[%s887_s2 + $0x1] ss:$0 sm:$0xff]  ;;  %v450_v7 = vld [vmem:[%s887_s2 + $0x3] ss:$0 sm:$0xff]  ;;  %v449_v8 = vld [vmem:[%s887_s2 + $0x2] ss:$0 sm:$0xff] }
  0x3d   : > { %vm210_vm0 = vcmask 261120   ;;  %v206_v9 = vld [vmem:[%s183_s21] sm:$0xff]  ;;  %v207_v10 = vld [vmem:[%s183_s21 + $0x8] sm:$0xff]  ;;  %v208_v13 = vld [vmem:[%s183_s21 + $0x10] sm:$0xff]  ;;  %s457_s10 = sshll.u32 %s633_s15, 9  ;;  %s334_s15 = scalar_lea.sflag [#allocation4], %s782_s11 }
  0x3e   : > { %v211_v11 = vsel %vm210_vm0, %v206_v9, 0.0  ;;  %v212_v12 = vsel %vm210_vm0, %v207_v10, 0.0  ;;  %v214_v15 = vsel %vm210_vm0, %v208_v13, 0.0  ;;  %v209_v16 = vld [vmem:[%s183_s21 + $0x18] sm:$0xff]  ;;  %s205_s21 = scalar_lea.vmem [#allocation5], %s441_s18  ;;  %s834_s23 = scalar_lea.hbm %s888_s3, %s457_s10 }
  0x3f   : > { %v213_v14 = vadd.f32 %v212_v12, %v211_v11  ;;  %v216_v18 = vsel %vm210_vm0, %v209_v16, 0.0  ;;  %s348_s9 = sshll.u32 %s205_s21, 4  ;;  %p896_p9 = scmp.ne.s32.totalorder %s892_s25, 0  ;;  %s827_s9 = int_to_ptr.vmem [resolvable:$true] %s348_s9 }
  0x40   : > { %278 = vperm.xlu1 %526, %v446_v3   ;;  %270 = vperm.xlu0 %525, %v444_v4   ;;  %s559_s28 = scalar_lea.vmem %s827_s9, 512  ;;  %s647_s24 = smov [#allocation5]  }
  0x41   : > { %v215_v17 = vadd.f32 %v214_v15, %v213_v14  ;;  %p560_p8 = scmp.ne.s32.totalorder %s827_s9, %s559_s28  ;;  %s563_s29 = sshll.u32 %s647_s24, 4  ;;  %s564_s29 = int_to_ptr.vmem [resolvable:$false] %s563_s29 }
  0x42   : > { %s565_s30 = scalar_lea.vmem %s564_s29, 1024  ;;  %p566_p6 = scmp.lt.s32.totalorder %s827_s9, %s564_s29 }
  0x43   : > { %v217_v19 = vadd.f32 %v216_v18, %v215_v17  ;;  %p561_p11 = pnand %p560_p8, %p896_p9  ;;  %p567_p13 = scmp.lt.s32.totalorder %s565_s30, %s559_s28 }
  0x44   : > { %314 = vperm.xlu1 %526, %v448_v5   ;;  %310 = vperm.xlu0 %525, %v447_v6  }
  0x45   : > { %v218_v20 = vmul.f32 0.25, %v217_v19  ;;  %p562_p0 = pneg %p561_p11  ;;  %p568_p2 = por %p567_p13, %p566_p6 }
  0x47   : > { %v219_v21 = vsub.f32 %v206_v9, %v218_v20  ;;  %v220_v22 = vsub.f32 %v207_v10, %v218_v20  ;;  %v221_v23 = vsub.f32 %v208_v13, %v218_v20  ;;  %v222_v26 = vsub.f32 %v209_v16, %v218_v20  ;;  %p569_p5 = pnand %p568_p2, %p562_p0 }
  0x48   : > { %322 = vperm.xlu1 %526, %v450_v7   ;;  %318 = vperm.xlu0 %525, %v449_v8  }
  0x49   : > { %v223_v24 = vmul.f32 %v219_v21, %v219_v21  ;;  %v224_v25 = vmul.f32 %v220_v22, %v220_v22  ;;  %v225_v27 = vmul.f32 %v221_v23, %v221_v23  ;;  %v226_v31 = vmul.f32 %v222_v26, %v222_v26 }
  0x4b   : > { %v227_v28 = vsel %vm210_vm0, %v223_v24, 0.0  ;;  %v228_v29 = vsel %vm210_vm0, %v224_v25, 0.0  ;;  %v230_v32 = vsel %vm210_vm0, %v225_v27, 0.0  ;;  %v232_v34 = vsel %vm210_vm0, %v226_v31, 0.0 }
  0x4c   : > { %v229_v30 = vadd.f32 %v228_v29, %v227_v28 }
  0x4e   : > { %v231_v33 = vadd.f32 %v230_v32, %v229_v30 }
  0x50   : > { %v233_v35 = vadd.f32 %v232_v34, %v231_v33 }
  0x52   : > { %v234_v36 = vmul.f32 0.25, %v233_v35 }
  0x54   : > { %v235_v37 = vadd.f32 1e-05, %v234_v36 }
  0x56   : > { %527 = vrsqrt.f32 %v235_v37 }
  0x60   : > { %v528_v38 = vpop.eup %527 }
  0x61   : > { %v237_v41 = vmul.f32 %v528_v38, %v219_v21  ;;  %v238_v42 = vmul.f32 %v528_v38, %v220_v22  ;;  %v239_v45 = vmul.f32 %v528_v38, %v221_v23  ;;  %v240_v47 = vmul.f32 %v528_v38, %v222_v26 }
  0xbb   : > { %v275_v39 = vpop.permute.xlu1 %274  ;;  %v267_v40 = vpop.permute.xlu0 %266 }
  0xbc   : > { %v281_v46 = vmul.f32 %v267_v40, %v237_v41  ;;  %v283_v53 = vmul.f32 %v275_v39, %v239_v45 }
  0xbf   : > { %v279_v43 = vpop.permute.xlu1 %278  ;;  %v271_v44 = vpop.permute.xlu0 %270 }
  0xc0   : > { %v282_v48 = vmul.f32 %v271_v44, %v238_v42  ;;  %v284_v54 = vmul.f32 %v279_v43, %v240_v47 }
  0xc3   : > { %v315_v49 = vpop.permute.xlu1 %314  ;;  %v311_v50 = vpop.permute.xlu0 %310 }
  0xc4   : > { %v326_v51 = vadd.f32 %v315_v49, %v282_v48  ;;  %v325_v52 = vadd.f32 %v311_v50, %v281_v46 }
  0xc6   : > { %330 = vst.msk [vmem:[%s205_s21 + $0x8] sm:$0xff] %vm210_vm0, %v326_v51  ;;  %329 = vst.msk [vmem:[%s205_s21] sm:$0xff] %vm210_vm0, %v325_v52 }
  0xc7   : > { %v323_v55 = vpop.permute.xlu1 %322  ;;  %v319_v56 = vpop.permute.xlu0 %318 }
  0xc8   : > { %v328_v57 = vadd.f32 %v323_v55, %v284_v54  ;;  %v327_v58 = vadd.f32 %v319_v56, %v283_v53 }
  0xca   : > { %332 = vst.msk [vmem:[%s205_s21 + $0x18] sm:$0xff] %vm210_vm0, %v328_v57  ;;  %331 = vst.msk [vmem:[%s205_s21 + $0x10] sm:$0xff] %vm210_vm0, %v327_v58 }
  0xcb   : > { %572 = shalt.err (!%p569_p5)
}
  0xcc   : > { %s573_s4 = scalar_lea.hbm %s834_s23, 512  ;;  %s577_s19 = scalar_lea.hbm %s888_s3, 1024 }
  0xcd   : > { %p574_p4 = scmp.ne.s32.totalorder %s834_s23, %s573_s4  ;;  %p578_p12 = scmp.lt.u32.totalorder %s834_s23, %s888_s3 }
  0xce   : > { %p579_p1 = scmp.lt.u32.totalorder %s577_s19, %s573_s4  ;;  %p581_p8 = scmp.lt.u32.totalorder %s573_s4, %s834_s23 }
  0xcf   : > { %p575_p7 = pnand %p574_p4, %p896_p9 }
  0xd0   : > { %p580_p3 = por %p579_p1, %p578_p12 }
  0xd1   : > { %p576_p10 = pneg %p575_p7 }
  0xd2   : > { %p582_p11 = por %p581_p8, %p580_p3 }
  0xd4   : > { %p583_p0 = pnand %p582_p11, %p576_p10 }
  0xd6   : > { %586 = shalt.err (!%p583_p0)
}
  0xd7   : > { %s648_s21 = smov 128   ;;  %s649_s10 = smov 8  }
  0xd8   : > { %460 = dma.vmem_to_hbm [thread:$0]  (%p896_p9), %s827_s9, 512, %s834_s23, %s334_s15, %s648_s21, %s648_s21, %s649_s10  }
  0xd9 PF: > { %s363_s18 = sand.u32 1, %s621_s12   ;;  %p897_p6 = scmp.ne.s32.totalorder %s893_s27, 0 }
  0xda   : > { %p898_p13 = scmp.ge.s32.totalorder %s641_s17, 2  ;;  %s364_s22 = scalar_lea.sflag [#allocation4], %s363_s18 }
  0xdc   : > { %p467_p2 = pnand %p898_p13, %p897_p6 }
  0xde   : > { %616 = dma.done.wait (!%p467_p2), %s364_s22, 512  }
  0xdf   : > { %618 = vsyncadd (!%p467_p2), %s364_s22, 4294966784  ;;  %s19_s17 = sadd.s32 1, %s641_s17   ;;  %s899_s12 = smov %s625_s13 }
  0xe0   : > { %p16_p5 = scmp.ge.s32.totalorder %s19_s17, 4   ;;  %s900_s13 = smov %s629_s14 }
  0xe1   : > { %s901_s14 = smov %s726_s26  ;;  %s902_s15 = smov %s637_s16 }
  0xe2   : > { %s903_s16 = smov %s905_s20  ;;  %18 = sbr.rel (!%p16_p5) target bundleno = 6 (0x6), region = 77 }
  0xe9   :  { %369 = vsyncpa [#allocation3], 1 }
  0xea   :  { %371 = vsyncpa [#allocation3 + $0x1], 1 }
  0xeb   :  { %372 = vsyncpa [#allocation4], 1 }
  0xec   :  { %374 = vsyncpa [#allocation4 + $0x1], 1 }

// kernel: tpu_custom_call.1
= control target key start
LH: loop header
LB: loop body
LE: loop exit
PB: predicated region body
PF: predicated region fallthrough
CT: control target
= control target key end

     0   :  { %8 = vsyncpa [#allocation3], 0  ;;  %s885_s0 = inlined_call_operand.hbm [shape: f32[2,4,8,32], index: 0, kind: input, shape index: {}]   ;;  %s886_s1 = inlined_call_operand.vmem [shape: f32[1,4,1,1], index: 1, kind: input, shape index: {}]   ;;  %s887_s2 = inlined_call_operand.vmem [shape: f32[1,4,1,1], index: 2, kind: input, shape index: {}]   ;;  %s888_s3 = inlined_call_operand.hbm [shape: f32[2,4,8,32], index: 3, kind: output, shape index: {}]  }
   0x1   :  { %10 = vsyncpa [#allocation3 + $0x1], 0 }
   0x2   :  { %11 = vsyncpa [#allocation4], 0 }
   0x3   :  { %13 = vsyncpa [#allocation4 + $0x1], 0  ;;  %s670_s12 = smov 0   ;;  %s672_s13 = smov 0  }
   0x4   :  { %s674_s14 = smov 0   ;;  %s676_s15 = smov 0  }
   0x5   :  { %s678_s16 = smov 0   ;;  %s680_s17 = smov 0  }
   0x6 LB: > { %s433_s18 = sadd.s32 4294967295, %s641_s17   ;;  %s434_s19 = sadd.s32 4294967294, %s641_s17   ;;  %s641_s17 = sphi %s680_s17, %s19_s17   ;;  %s637_s16 = sphi %s678_s16, %s903_s16   ;;  %s633_s15 = sphi %s676_s15, %s902_s15   ;;  %s629_s14 = sphi %s674_s14, %s901_s14   ;;  %s625_s13 = sphi %s672_s13, %s900_s13   ;;  %s621_s12 = sphi %s670_s12, %s899_s12  }
   0x7   : > { %s31_s20 = sadd.s32 1, %s637_s16  ;;  %s40_s21 = sadd.s32 1, %s629_s14 }
   0x8   : > { %p33_p0 = scmp.ge.s32.totalorder %s31_s20, 2  ;;  %p47_p1 = scmp.ne.s32.totalorder %s629_s14, %s625_s13 }
   0x9   : > { %p48_p2 = scmp.eq.s32.totalorder %s641_s17, 0  ;;  %p53_p3 = scmp.ne.s32.totalorder %s625_s13, %s621_s12 }
   0xa   : > { %s905_s20 = smov (%p33_p0, %s31_s20), 0  ;;  %p54_p5 = scmp.eq.s32.totalorder %s433_s18, 0 }
   0xb   : > { %p711_p4 = por %p48_p2, %p47_p1  ;;  %s35_s23 = ssub.s32 %s637_s16, %s905_s20 }
   0xc   : > { %p121_p6 = scmp.eq.s32.totalorder %s433_s18, 1  ;;  %p38_p7 = scmp.eq.s32.totalorder %s35_s23, 0 }
   0xd   : > { %p717_p8 = por %p54_p5, %p53_p3  ;;  %p127_p10 = scmp.eq.s32.totalorder %s434_s19, 1 }
   0xe   : > { %p721_p9 = por %p121_p6, %p47_p1  ;;  %p470_p13 = scmp.lt.s32.totalorder %s641_s17, 2 }
   0xf   : > { %s726_s26 = scalar_select %p38_p7, %s629_s14, %s40_s21  }
  0x10   : > { %s892_s25 = scalar_select %p721_p9, 1, 0 }
  0x11   : > { %p728_p11 = por %p127_p10, %p53_p3  ;;  %s153_s28 = sand.u32 1, %s629_s14  }
  0x12   : > { %s437_s29 = sshll.u32 %s153_s28, 5  ;;  %s456_s30 = sshll.u32 %s637_s16, 9 }
  0x13   : > { %s893_s27 = scalar_select %p728_p11, 1, 0 }
  0x14   : > { %s739_s6 = scalar_lea.hbm %s885_s0, %s456_s30  ;;  %s157_s7 = scalar_lea.vmem [#allocation2], %s437_s29 }
  0x15   : > { %s165_s8 = sshll.u32 %s157_s7, 4  ;;  %p745_p0 = pnand %p470_p13, %p711_p4  ;;  %s741_s8 = int_to_ptr.vmem [resolvable:$true] %s165_s8 }
  0x16   : > { %s750_s10 = scalar_lea.sflag [#allocation3], %s153_s28  ;;  %s529_s11 = scalar_lea.hbm %s739_s6, 512 }
  0x17   : > { %p530_p2 = scmp.ne.s32.totalorder %s739_s6, %s529_s11  ;;  %p531_p3 = pneg %p745_p0 }
  0x18   : > { %s534_s21 = scalar_lea.hbm %s885_s0, 1024  ;;  %p535_p4 = scmp.lt.u32.totalorder %s739_s6, %s885_s0 }
  0x19   : > { %p532_p5 = pnand %p531_p3, %p530_p2  ;;  %p536_p7 = scmp.lt.u32.totalorder %s534_s21, %s529_s11 }
  0x1a   : > { %p538_p13 = scmp.lt.u32.totalorder %s529_s11, %s739_s6 }
  0x1b   : > { %p533_p6 = pneg %p532_p5  ;;  %p537_p10 = por %p536_p7, %p535_p4 }
  0x1d   : > { %p539_p12 = por %p538_p13, %p537_p10 }
  0x1f   : > { %p540_p1 = pnand %p539_p12, %p533_p6 }
  0x21   : > { %543 = shalt.err (!%p540_p1)
}
  0x22   : > { %s544_s28 = scalar_lea.vmem %s741_s8, 512  ;;  %s643_s29 = smov [#allocation2]  }
  0x23   : > { %p545_p2 = scmp.ne.s32.totalorder %s741_s8, %s544_s28  ;;  %s549_s30 = sshll.u32 %s643_s29, 4  ;;  %s550_s30 = int_to_ptr.vmem [resolvable:$false] %s549_s30 }
  0x24   : > { %s551_s4 = scalar_lea.vmem %s550_s30, 1024  ;;  %p552_p9 = scmp.lt.s32.totalorder %s741_s8, %s550_s30 }
  0x25   : > { %p547_p5 = pnand %p545_p2, %p531_p3  ;;  %p553_p4 = scmp.lt.s32.totalorder %s551_s4, %s544_s28 }
  0x27   : > { %p548_p11 = pneg %p547_p5  ;;  %p554_p7 = por %p553_p4, %p552_p9 }
  0x29   : > { %p555_p10 = pnand %p554_p7, %p548_p11 }
  0x2b   : > { %558 = shalt.err (!%p555_p10)
}
  0x2c   : > { %s644_s5 = smov 128   ;;  %s645_s7 = smov 8  }
  0x2d   : > { %465 = dma.hbm_to_vmem [thread:$0]  (!%p745_p0), %s739_s6, 512, %s741_s8, %s750_s10, %s644_s5, %s644_s5, %s645_s7  }
  0x2e   : > { %p173_p12 = scmp.lt.s32.totalorder %s641_s17, 3  ;;  %p895_p1 = scmp.ge.s32.totalorder %s641_s17, 1 }
  0x30   : > { %p174_p3 = pnand %p895_p1, %p173_p12 }
  0x31   : > { %s782_s11 = sand.u32 (!%p174_p3), 1, %s625_s13  }
  0x32   : > { %177 = sbr.rel (%p174_p3) target bundleno = 217 (0xd9), region = 32  ;;  %s441_s18 = sshll.u32 (!%p174_p3), %s782_s11, 5 }
  0x33   : > { %s180_s19 = scalar_lea.sflag (!%p174_p3), [#allocation3], %s782_s11  ;;  %s183_s21 = scalar_lea.vmem (!%p174_p3), [#allocation2], %s441_s18 }
  0x39   : > { %612 = dma.done.wait (%p717_p8), %s180_s19, 512  }
  0x3a   : > { %614 = vsyncadd (%p717_p8), %s180_s19, 4294966784  ;;  %v646_v0 = vmov 0   ;;  %v445_v1 = vld [vmem:[%s886_s1 + $0x2] ss:$0 sm:$0xff]  ;;  %v443_v2 = vld [vmem:[%s886_s1] ss:$0 sm:$0xff] }
  0x3b   : > { %526 = vset.pattern.permute.xlu1 %v646_v0  ;;  %525 = vset.pattern.permute.xlu0 %v646_v0  ;;  %v446_v3 = vld [vmem:[%s886_s1 + $0x3] ss:$0 sm:$0xff]  ;;  %v444_v4 = vld [vmem:[%s886_s1 + $0x1] ss:$0 sm:$0xff]  ;;  %v447_v6 = vld [vmem:[%s887_s2] ss:$0 sm:$0xff] }
  0x3c   : > { %274 = vperm.xlu1 %526, %v445_v1   ;;  %266 = vperm.xlu0 %525, %v443_v2   ;;  %v448_v5 = vld [vmem:[%s887_s2 + $0x1] ss:$0 sm:$0xff]  ;;  %v450_v7 = vld [vmem:[%s887_s2 + $0x3] ss:$0 sm:$0xff]  ;;  %v449_v8 = vld [vmem:[%s887_s2 + $0x2] ss:$0 sm:$0xff] }
  0x3d   : > { %vm210_vm0 = vcmask 261120   ;;  %v206_v9 = vld [vmem:[%s183_s21] sm:$0xff]  ;;  %v207_v10 = vld [vmem:[%s183_s21 + $0x8] sm:$0xff]  ;;  %v208_v13 = vld [vmem:[%s183_s21 + $0x10] sm:$0xff]  ;;  %s457_s10 = sshll.u32 %s633_s15, 9  ;;  %s334_s15 = scalar_lea.sflag [#allocation4], %s782_s11 }
  0x3e   : > { %v211_v11 = vsel %vm210_vm0, %v206_v9, 0.0  ;;  %v212_v12 = vsel %vm210_vm0, %v207_v10, 0.0  ;;  %v214_v15 = vsel %vm210_vm0, %v208_v13, 0.0  ;;  %v209_v16 = vld [vmem:[%s183_s21 + $0x18] sm:$0xff]  ;;  %s205_s21 = scalar_lea.vmem [#allocation5], %s441_s18  ;;  %s834_s23 = scalar_lea.hbm %s888_s3, %s457_s10 }
  0x3f   : > { %v213_v14 = vadd.f32 %v212_v12, %v211_v11  ;;  %v216_v18 = vsel %vm210_vm0, %v209_v16, 0.0  ;;  %s348_s9 = sshll.u32 %s205_s21, 4  ;;  %p896_p9 = scmp.ne.s32.totalorder %s892_s25, 0  ;;  %s827_s9 = int_to_ptr.vmem [resolvable:$true] %s348_s9 }
  0x40   : > { %278 = vperm.xlu1 %526, %v446_v3   ;;  %270 = vperm.xlu0 %525, %v444_v4   ;;  %s559_s28 = scalar_lea.vmem %s827_s9, 512  ;;  %s647_s24 = smov [#allocation5]  }
  0x41   : > { %v215_v17 = vadd.f32 %v214_v15, %v213_v14  ;;  %p560_p8 = scmp.ne.s32.totalorder %s827_s9, %s559_s28  ;;  %s563_s29 = sshll.u32 %s647_s24, 4  ;;  %s564_s29 = int_to_ptr.vmem [resolvable:$false] %s563_s29 }
  0x42   : > { %s565_s30 = scalar_lea.vmem %s564_s29, 1024  ;;  %p566_p6 = scmp.lt.s32.totalorder %s827_s9, %s564_s29 }
  0x43   : > { %v217_v19 = vadd.f32 %v216_v18, %v215_v17  ;;  %p561_p11 = pnand %p560_p8, %p896_p9  ;;  %p567_p13 = scmp.lt.s32.totalorder %s565_s30, %s559_s28 }
  0x44   : > { %314 = vperm.xlu1 %526, %v448_v5   ;;  %310 = vperm.xlu0 %525, %v447_v6  }
  0x45   : > { %v218_v20 = vmul.f32 0.25, %v217_v19  ;;  %p562_p0 = pneg %p561_p11  ;;  %p568_p2 = por %p567_p13, %p566_p6 }
  0x47   : > { %v219_v21 = vsub.f32 %v206_v9, %v218_v20  ;;  %v220_v22 = vsub.f32 %v207_v10, %v218_v20  ;;  %v221_v23 = vsub.f32 %v208_v13, %v218_v20  ;;  %v222_v26 = vsub.f32 %v209_v16, %v218_v20  ;;  %p569_p5 = pnand %p568_p2, %p562_p0 }
  0x48   : > { %322 = vperm.xlu1 %526, %v450_v7   ;;  %318 = vperm.xlu0 %525, %v449_v8  }
  0x49   : > { %v223_v24 = vmul.f32 %v219_v21, %v219_v21  ;;  %v224_v25 = vmul.f32 %v220_v22, %v220_v22  ;;  %v225_v27 = vmul.f32 %v221_v23, %v221_v23  ;;  %v226_v31 = vmul.f32 %v222_v26, %v222_v26 }
  0x4b   : > { %v227_v28 = vsel %vm210_vm0, %v223_v24, 0.0  ;;  %v228_v29 = vsel %vm210_vm0, %v224_v25, 0.0  ;;  %v230_v32 = vsel %vm210_vm0, %v225_v27, 0.0  ;;  %v232_v34 = vsel %vm210_vm0, %v226_v31, 0.0 }
  0x4c   : > { %v229_v30 = vadd.f32 %v228_v29, %v227_v28 }
  0x4e   : > { %v231_v33 = vadd.f32 %v230_v32, %v229_v30 }
  0x50   : > { %v233_v35 = vadd.f32 %v232_v34, %v231_v33 }
  0x52   : > { %v234_v36 = vmul.f32 0.25, %v233_v35 }
  0x54   : > { %v235_v37 = vadd.f32 1e-05, %v234_v36 }
  0x56   : > { %527 = vrsqrt.f32 %v235_v37 }
  0x60   : > { %v528_v38 = vpop.eup %527 }
  0x61   : > { %v237_v41 = vmul.f32 %v528_v38, %v219_v21  ;;  %v238_v42 = vmul.f32 %v528_v38, %v220_v22  ;;  %v239_v45 = vmul.f32 %v528_v38, %v221_v23  ;;  %v240_v47 = vmul.f32 %v528_v38, %v222_v26 }
  0xbb   : > { %v275_v39 = vpop.permute.xlu1 %274  ;;  %v267_v40 = vpop.permute.xlu0 %266 }
  0xbc   : > { %v281_v46 = vmul.f32 %v267_v40, %v237_v41  ;;  %v283_v53 = vmul.f32 %v275_v39, %v239_v45 }
  0xbf   : > { %v279_v43 = vpop.permute.xlu1 %278  ;;  %v271_v44 = vpop.permute.xlu0 %270 }
  0xc0   : > { %v282_v48 = vmul.f32 %v271_v44, %v238_v42  ;;  %v284_v54 = vmul.f32 %v279_v43, %v240_v47 }
  0xc3   : > { %v315_v49 = vpop.permute.xlu1 %314  ;;  %v311_v50 = vpop.permute.xlu0 %310 }
  0xc4   : > { %v326_v51 = vadd.f32 %v315_v49, %v282_v48  ;;  %v325_v52 = vadd.f32 %v311_v50, %v281_v46 }
  0xc6   : > { %330 = vst.msk [vmem:[%s205_s21 + $0x8] sm:$0xff] %vm210_vm0, %v326_v51  ;;  %329 = vst.msk [vmem:[%s205_s21] sm:$0xff] %vm210_vm0, %v325_v52 }
  0xc7   : > { %v323_v55 = vpop.permute.xlu1 %322  ;;  %v319_v56 = vpop.permute.xlu0 %318 }
  0xc8   : > { %v328_v57 = vadd.f32 %v323_v55, %v284_v54  ;;  %v327_v58 = vadd.f32 %v319_v56, %v283_v53 }
  0xca   : > { %332 = vst.msk [vmem:[%s205_s21 + $0x18] sm:$0xff] %vm210_vm0, %v328_v57  ;;  %331 = vst.msk [vmem:[%s205_s21 + $0x10] sm:$0xff] %vm210_vm0, %v327_v58 }
  0xcb   : > { %572 = shalt.err (!%p569_p5)
}
  0xcc   : > { %s573_s4 = scalar_lea.hbm %s834_s23, 512  ;;  %s577_s19 = scalar_lea.hbm %s888_s3, 1024 }
  0xcd   : > { %p574_p4 = scmp.ne.s32.totalorder %s834_s23, %s573_s4  ;;  %p578_p12 = scmp.lt.u32.totalorder %s834_s23, %s888_s3 }
  0xce   : > { %p579_p1 = scmp.lt.u32.totalorder %s577_s19, %s573_s4  ;;  %p581_p8 = scmp.lt.u32.totalorder %s573_s4, %s834_s23 }
  0xcf   : > { %p575_p7 = pnand %p574_p4, %p896_p9 }
  0xd0   : > { %p580_p3 = por %p579_p1, %p578_p12 }
  0xd1   : > { %p576_p10 = pneg %p575_p7 }
  0xd2   : > { %p582_p11 = por %p581_p8, %p580_p3 }
  0xd4   : > { %p583_p0 = pnand %p582_p11, %p576_p10 }
  0xd6   : > { %586 = shalt.err (!%p583_p0)
}
  0xd7   : > { %s648_s21 = smov 128   ;;  %s649_s10 = smov 8  }
  0xd8   : > { %460 = dma.vmem_to_hbm [thread:$0]  (%p896_p9), %s827_s9, 512, %s834_s23, %s334_s15, %s648_s21, %s648_s21, %s649_s10  }
  0xd9 PF: > { %s363_s18 = sand.u32 1, %s621_s12   ;;  %p897_p6 = scmp.ne.s32.totalorder %s893_s27, 0 }
  0xda   : > { %p898_p13 = scmp.ge.s32.totalorder %s641_s17, 2  ;;  %s364_s22 = scalar_lea.sflag [#allocation4], %s363_s18 }
  0xdc   : > { %p467_p2 = pnand %p898_p13, %p897_p6 }
  0xde   : > { %616 = dma.done.wait (!%p467_p2), %s364_s22, 512  }
  0xdf   : > { %618 = vsyncadd (!%p467_p2), %s364_s22, 4294966784  ;;  %s19_s17 = sadd.s32 1, %s641_s17   ;;  %s899_s12 = smov %s625_s13 }
  0xe0   : > { %p16_p5 = scmp.ge.s32.totalorder %s19_s17, 4   ;;  %s900_s13 = smov %s629_s14 }
  0xe1   : > { %s901_s14 = smov %s726_s26  ;;  %s902_s15 = smov %s637_s16 }
  0xe2   : > { %s903_s16 = smov %s905_s20  ;;  %18 = sbr.rel (!%p16_p5) target bundleno = 6 (0x6), region = 77 }
  0xe9   :  { %369 = vsyncpa [#allocation3], 1 }
  0xea   :  { %371 = vsyncpa [#allocation3 + $0x1], 1 }
  0xeb   :  { %372 = vsyncpa [#allocation4], 1 }
  0xec   :  { %374 = vsyncpa [#allocation4 + $0x1], 1 }

</bundles_post_ra>
